<compile_context>
chip_gen: v7x
topology: tpu7x:2x2x1
jax: 0.10.0
libtpu: 0.0.40
codegen_flags: <defaults>
</compile_context>

<pallas_src>
import functools

import jax
import jax.numpy as jnp
from jax import lax
from jax.experimental import pallas as pl
from jax.experimental.pallas import tpu as pltpu


# ----------------------------------------------------------------------------
# Tiling / budget helpers
# ----------------------------------------------------------------------------
def _round_up(x, m):
    return ((x + m - 1) // m) * m


def _cdiv(a, b):
    return -(-a // b)


def _budgets(M, itemsize, max_tk):
    """Generation-aware K-tile size and scoped-VMEM request cap."""
    try:
        vmem_cap = int(pltpu.get_tpu_info().vmem_capacity_bytes)
    except Exception:          # query can fail off-device; assume small chip
        vmem_cap = 64 << 20
    if vmem_cap >= (96 << 20):       # v5e / v6e: 128 MiB physical VMEM
        stream_cap = 48 << 20        # double-buffered feature-stream budget
        step_bytes = 4 << 20         # per-step feature-DMA byte target
        vmem_req_cap = 96 << 20
    else:                            # v7x: 64 MiB physical, keep headroom
        stream_cap = 24 << 20
        step_bytes = 4 << 20
        vmem_req_cap = 44 << 20
    tk_target = max(128, _round_up(step_bytes // max(1, M * itemsize), 128))
    tk_cap = max(128, (stream_cap // (2 * M * itemsize)) // 128 * 128)
    tk = min(tk_target, tk_cap, max(128, (max_tk // 128) * 128))
    return tk, vmem_req_cap


def _prep_features(x, max_tk, stream_bf16):
    """NCHW -> (M, K) feature matrix plus K tiling.

    No HBM round-trip padding: if K is not a tile multiple, the ragged final
    tile is zero-masked inside the kernel (exact for F @ F.T)."""
    a, b, c, d = x.shape
    M, K = a * b, c * d
    feats = x.reshape(M, K)                       # keep input dtype (bf16 ok)
    if stream_bf16 and feats.dtype == jnp.float32:
        feats = feats.astype(jnp.bfloat16)        # opt-in: halves HBM traffic
    itemsize = feats.dtype.itemsize
    tk, vmem_req_cap = _budgets(M, itemsize, max_tk)
    if tk >= K:
        tk, nk = K, 1        # single tile: block == full array dim (any K ok)
    else:
        nk = _cdiv(K, tk)    # tk is a multiple of 128 -> valid lane tiling
    rem = K - (nk - 1) * tk  # width of the (possibly ragged) last tile
    scale = 1.0 / float(a * b * c * d)            # true (unmasked) normalizer
    return feats, M, tk, nk, rem, scale, itemsize, vmem_req_cap


def _vmem_limit_bytes(M, tk, itemsize, cap):
    # double-buffered feature stream + two (M, M) f32 buffers + slack
    need = 2 * M * tk * itemsize + 2 * M * M * 4 + (4 << 20)
    return int(min(max(2 * need, 32 << 20), cap))


def _load_tile(f_ref, rem, tk):
    """Load the current (M, tk) feature tile; zero the out-of-bounds columns
    of the ragged last tile (their contents are unspecified)."""
    f = f_ref[...]
    if rem != tk:  # static: only emitted when K % tk != 0
        col = lax.broadcasted_iota(jnp.int32, f.shape, dimension=1)
        limit = jnp.where(pl.program_id(0) == pl.num_programs(0) - 1, rem, tk)
        f = jnp.where(col < limit, f, 0)
    return f


# ----------------------------------------------------------------------------
# Kernel 1: gram matrix only (builds the detached `target` in __init__)
# ----------------------------------------------------------------------------
def _gram_kernel(f_ref, g_ref, *, scale, rem, tk):
    k = pl.program_id(0)

    @pl.when(k == 0)
    def _():
        g_ref[...] = jnp.zeros_like(g_ref)       # resident output = accumulator

    f = _load_tile(f_ref, rem, tk)
    # F @ F.T expressed as a dim1/dim1 contraction (no explicit transpose).
    g_ref[...] += lax.dot_general(
        f, f,
        dimension_numbers=(((1,), (1,)), ((), ())),
        preferred_element_type=jnp.float32)

    @pl.when(k == pl.num_programs(0) - 1)
    def _():
        g_ref[...] *= scale


def gram_matrix_pallas(x, *, max_tk=32768, stream_bf16=False):
    """x: NCHW array (a, b, c, d) -> gram matrix (a*b, a*b), float32."""
    feats, M, tk, nk, rem, scale, itemsize, cap = _prep_features(
        x, max_tk, stream_bf16)

    return pl.pallas_call(
        functools.partial(_gram_kernel, scale=scale, rem=rem, tk=tk),
        out_shape=jax.ShapeDtypeStruct((M, M), jnp.float32),
        grid_spec=pltpu.PrefetchScalarGridSpec(
            num_scalar_prefetch=0,
            grid=(nk,),
            in_specs=[pl.BlockSpec((M, tk), lambda k: (0, k))],
            out_specs=pl.BlockSpec((M, M), lambda k: (0, 0)),
        ),
        compiler_params=pltpu.CompilerParams(
            dimension_semantics=("arbitrary",),
            vmem_limit_bytes=_vmem_limit_bytes(M, tk, itemsize, cap)),
    )(feats)


# ----------------------------------------------------------------------------
# Kernel 2: fused gram matrix + MSE loss against the target gram (forward)
# ----------------------------------------------------------------------------
def _style_loss_kernel(f_ref, tgt_hbm, loss_ref, acc_ref, tgt_vmem, tgt_sem,
                       *, scale, inv_mm, rem, tk):
    k = pl.program_id(0)

    @pl.when(k == 0)
    def _():
        acc_ref[...] = jnp.zeros_like(acc_ref)
        # Start the target-gram DMA now; it hides behind all K steps and uses
        # a single VMEM buffer (not a double-buffered pipelined input).
        pltpu.make_async_copy(tgt_hbm, tgt_vmem, tgt_sem).start()

    f = _load_tile(f_ref, rem, tk)
    acc_ref[...] += lax.dot_general(
        f, f,
        dimension_numbers=(((1,), (1,)), ((), ())),
        preferred_element_type=jnp.float32)

    @pl.when(k == pl.num_programs(0) - 1)
    def _():
        pltpu.make_async_copy(tgt_hbm, tgt_vmem, tgt_sem).wait()
        diff = acc_ref[...] * scale - tgt_vmem[...]
        # (1,1) output written exactly once at the very end -> the masked
        # 1-lane store is a one-off epilogue cost, off the K loop.
        loss_ref[0, 0] = jnp.sum(diff * diff) * inv_mm


def style_loss_forward(x, target_gram, *, max_tk=32768, stream_bf16=False):
    """Returns (input_unchanged, scalar_mse_loss)."""
    feats, M, tk, nk, rem, scale, itemsize, cap = _prep_features(
        x, max_tk, stream_bf16)
    assert target_gram.shape == (M, M)
    inv_mm = 1.0 / float(M * M)

    loss = pl.pallas_call(
        functools.partial(_style_loss_kernel, scale=scale, inv_mm=inv_mm,
                          rem=rem, tk=tk),
        out_shape=jax.ShapeDtypeStruct((1, 1), jnp.float32),
        grid_spec=pltpu.PrefetchScalarGridSpec(
            num_scalar_prefetch=0,
            grid=(nk,),
            in_specs=[
                pl.BlockSpec((M, tk), lambda k: (0, k)),   # streamed features
                pl.BlockSpec(memory_space=pl.ANY),         # target gram (HBM)
            ],
            out_specs=pl.BlockSpec((1, 1), lambda k: (0, 0)),
            scratch_shapes=[
                pltpu.VMEM((M, M), jnp.float32),           # gram accumulator
                pltpu.VMEM((M, M), jnp.float32),           # target landing buf
                pltpu.SemaphoreType.DMA,                   # target DMA sem
            ],
        ),
        compiler_params=pltpu.CompilerParams(
            dimension_semantics=("arbitrary",),
            vmem_limit_bytes=_vmem_limit_bytes(M, tk, itemsize, cap)),
    )(feats, target_gram.astype(jnp.float32))

    return x, loss[0, 0]


# ----------------------------------------------------------------------------
# Module-like wrapper mirroring StyleLoss
# ----------------------------------------------------------------------------
class StyleLossPallas:
    def __init__(self, target_feature, *, max_tk=32768, stream_bf16=False):
        self._max_tk = max_tk
        self._stream_bf16 = stream_bf16
        # target gram computed once, "detached" (just a constant array)
        self.target = gram_matrix_pallas(
            target_feature, max_tk=max_tk, stream_bf16=stream_bf16)
        self.loss = jnp.float32(0.0)

    def __call__(self, x):
        out, loss = style_loss_forward(
            x, self.target, max_tk=self._max_tk, stream_bf16=self._stream_bf16)
        self.loss = loss
        return out


if __name__ == "__main__":
    key = jax.random.PRNGKey(0)
    k_t1, k_x1, k_t2, k_x2, k_t3, k_x3 = jax.random.split(key, 6)

    def ref_gram(t):
        a, b, c, d = t.shape
        f = t.reshape(a * b, c * d)
        return (f @ f.T) / (a * b * c * d)

    def check(module, x, tf):
        out = jax.block_until_ready(module(x))
        loss = jax.block_until_ready(module.loss)
        ref_t = ref_gram(tf)
        ref_l = jnp.mean((ref_gram(x) - ref_t) ** 2)
        assert out.shape == x.shape and jnp.allclose(out, x)
        assert jnp.allclose(module.target, ref_t, rtol=1e-5, atol=1e-5)
        assert jnp.allclose(loss, ref_l, rtol=1e-4, atol=1e-6)

    # --- case 1: K a multiple of 128, single tile ----------------------------
    shape = (2, 4, 16, 16)                    # features (8, 256), gram (8, 8)
    tf1 = jax.random.normal(k_t1, shape, dtype=jnp.float32)
    x1 = jax.random.normal(k_x1, shape, dtype=jnp.float32)
    check(StyleLossPallas(tf1), x1, tf1)

    # --- case 2: K NOT a multiple of 128, single full-width tile -------------
    shape2 = (2, 4, 14, 14)                   # features (8, 196), gram (8, 8)
    tf2 = jax.random.normal(k_t2, shape2, dtype=jnp.float32)
    x2 = jax.random.normal(k_x2, shape2, dtype=jnp.float32)
    check(StyleLossPallas(tf2), x2, tf2)

    # --- case 3: multi-tile K with a ragged last tile (in-kernel mask path) --
    shape3 = (1, 8, 20, 20)                   # features (8, 400), gram (8, 8)
    tf3 = jax.random.normal(k_t3, shape3, dtype=jnp.float32)
    x3 = jax.random.normal(k_x3, shape3, dtype=jnp.float32)
    check(StyleLossPallas(tf3, max_tk=128), x3, tf3)   # tk=128, nk=4, rem=16

    print("KERNEL_OK")
</pallas_src>

<mosaic_0001>
module attributes {stable_mosaic.version = 11 : i64} {
  func.func @_gram_kernel(%arg0: i32, %arg1: memref<8x256xf32, #tpu.memory_space<vmem>>, %arg2: memref<8x8xf32, #tpu.memory_space<vmem>>) attributes {dimension_semantics = [#tpu.dimension_semantics<arbitrary>], iteration_bounds = array<i64: 1>, scalar_prefetch = 0 : i64, scratch_operands = 0 : i64, tpu.core_type = #tpu.core_type<tc>, window_params = [{transform_indices = @transform_0, window_bounds = array<i64: 8, 256>}, {pipeline_mode = #tpu.pipeline_mode<synchronous>, transform_indices = @transform_1, window_bounds = array<i64: 8, 8>}]} {
    %c0_i32 = arith.constant 0 : i32
    %0 = arith.cmpi eq, %arg0, %c0_i32 : i32
    %1 = arith.extui %0 : i1 to i32
    %c0_i32_0 = arith.constant 0 : i32
    %2 = arith.cmpi ne, %1, %c0_i32_0 : i32
    scf.if %2 {
      %cst_8 = arith.constant 0.000000e+00 : f32
      %11 = vector.broadcast %cst_8 : f32 to vector<8x8xf32>
      %c0_9 = arith.constant 0 : index
      %c0_10 = arith.constant 0 : index
      %12 = vector.load %arg2[%c0_9, %c0_10] : memref<8x8xf32, #tpu.memory_space<vmem>>, vector<8x8xf32>
      tpu.vector_store %arg2[%c0_9, %c0_10], %11 {strides = array<i32>} : memref<8x8xf32, #tpu.memory_space<vmem>>, vector<8x8xf32>,
    } else {
    }
    %c0 = arith.constant 0 : index
    %c0_1 = arith.constant 0 : index
    %3 = vector.load %arg1[%c0, %c0_1] : memref<8x256xf32, #tpu.memory_space<vmem>>, vector<8x256xf32>
    %c0_2 = arith.constant 0 : index
    %c0_3 = arith.constant 0 : index
    %4 = vector.load %arg2[%c0_2, %c0_3] : memref<8x8xf32, #tpu.memory_space<vmem>>, vector<8x8xf32>
    %cst = arith.constant dense<0.000000e+00> : vector<8x8xf32>
    %5 = tpu.matmul %3, %3, %cst {dimension_numbers = #tpu.dot_dimension_numbers<[1], [1], [0], [0], [0, 0, 1, 0], [], []>} : vector<8x256xf32>, vector<8x256xf32>, vector<8x8xf32> -> vector<8x8xf32>
    %6 = arith.addf %4, %5 : vector<8x8xf32>
    %c0_4 = arith.constant 0 : index
    %c0_5 = arith.constant 0 : index
    %7 = vector.load %arg2[%c0_4, %c0_5] : memref<8x8xf32, #tpu.memory_space<vmem>>, vector<8x8xf32>
    tpu.vector_store %arg2[%c0_4, %c0_5], %6 {strides = array<i32>} : memref<8x8xf32, #tpu.memory_space<vmem>>, vector<8x8xf32>,
    %c0_i32_6 = arith.constant 0 : i32
    %8 = arith.cmpi eq, %arg0, %c0_i32_6 : i32
    %9 = arith.extui %8 : i1 to i32
    %c0_i32_7 = arith.constant 0 : i32
    %10 = arith.cmpi ne, %9, %c0_i32_7 : i32
    scf.if %10 {
      %c0_8 = arith.constant 0 : index
      %c0_9 = arith.constant 0 : index
      %11 = vector.load %arg2[%c0_8, %c0_9] : memref<8x8xf32, #tpu.memory_space<vmem>>, vector<8x8xf32>
      %cst_10 = arith.constant 4.8828125E-4 : f32
      %12 = vector.broadcast %cst_10 : f32 to vector<8x8xf32>
      %13 = arith.mulf %11, %12 : vector<8x8xf32>
      %c0_11 = arith.constant 0 : index
      %c0_12 = arith.constant 0 : index
      %14 = vector.load %arg2[%c0_11, %c0_12] : memref<8x8xf32, #tpu.memory_space<vmem>>, vector<8x8xf32>
      tpu.vector_store %arg2[%c0_11, %c0_12], %13 {strides = array<i32>} : memref<8x8xf32, #tpu.memory_space<vmem>>, vector<8x8xf32>,
    } else {
    }
    return
  }
  func.func @transform_0(%arg0: i32) -> (i32, i32) {
    %c0_i32 = arith.constant 0 : i32
    %c0_i32_0 = arith.constant 0 : i32
    return %c0_i32, %arg0 : i32, i32
  }
  func.func @transform_1(%arg0: i32) -> (i32, i32) {
    %c0_i32 = arith.constant 0 : i32
    %c0_i32_0 = arith.constant 0 : i32
    %c0_i32_1 = arith.constant 0 : i32
    return %c0_i32, %c0_i32_0 : i32, i32
  }
}

</mosaic_0001>

<bundles_post_ra>
// kernel: tpu_custom_call.1
= control target key start
LH: loop header
LB: loop body
LE: loop exit
PB: predicated region body
PF: predicated region fallthrough
CT: control target
= control target key end

     0   :  { %6 = vsyncpa [#allocation3], 0  ;;  %s215_s0 = inlined_call_operand.hbm [shape: f32[8,256], index: 0, kind: input, shape index: {}]   ;;  %s216_s1 = inlined_call_operand.hbm [shape: f32[8,8], index: 1, kind: output, shape index: {}]  }
   0x1   :  { %7 = vsyncpa [#allocation4], 0  ;;  %s175_s6 = smov [#allocation2]   ;;  %s127_s10 = scalar_lea.hbm %s215_s0, 256 }
   0x2   :  { %s14_s7 = sshll.u32 %s175_s6, 4  ;;  %p128_p0 = scmp.ne.s32.totalorder %s215_s0, %s127_s10  ;;  %s15_s7 = int_to_ptr.vmem [resolvable:$true] %s14_s7 }
   0x3   :  { %p131_p1 = scmp.lt.u32.totalorder %s127_s10, %s215_s0 }
   0x5   :  { %p133_p2 = pnand %p131_p1, %p128_p0 }
   0x7   :  { %136 = shalt.err (!%p133_p2)
}
   0x8   :  { %s137_s15 = scalar_lea.vmem %s15_s7, 256  ;;  %p142_p4 = scmp.lt.s32.totalorder %s15_s7, %s15_s7 }
   0x9   :  { %p138_p3 = scmp.ne.s32.totalorder %s15_s7, %s137_s15  ;;  %p143_p5 = scmp.lt.s32.totalorder %s137_s15, %s137_s15 }
   0xb   :  { %p144_p6 = por %p143_p5, %p142_p4 }
   0xd   :  { %p145_p7 = pnand %p144_p6, %p138_p3 }
   0xf   :  { %148 = shalt.err (!%p145_p7)
}
  0x10   :  { %17 = dma.hbm_to_vmem [thread:$0]  %s215_s0, 256, %s15_s7, [#allocation3]  }
  0x11   :  { %171 = dma.done.wait [#allocation3], 256  }
  0x12   :  { %172 = vsyncadd [#allocation3], 4294967040  ;;  %vm25_vm0 = vcmask 64512   ;;  %v176_v0 = vmov 0.0   ;;  %v28_v1 = vld [vmem:[#allocation2 + $0x8] sm:$0xff]  ;;  %v27_v2 = vld [vmem:[#allocation2] sm:$0xff] }
  0x13   :  { %26 = vst.msk [vmem:[#allocation5] sm:$0xff] %vm25_vm0, %v176_v0  ;;  %30 = vmatprep.subr.mxu0 %v28_v1  ;;  %94 = vmatprep.mubr.f32.mxu0 %v28_v1  ;;  %s177_s18 = smov [#allocation5]  }
  0x14   :  { %31 = vmatpush1.xpose.msra.mxu0 %v27_v2  ;;  %s115_s0 = sshll.u32 %s177_s18, 4  ;;  %s116_s0 = int_to_ptr.vmem [resolvable:$true] %s115_s0 }
  0x15   :  { %s149_s19 = scalar_lea.vmem %s116_s0, 128  ;;  %p154_p9 = scmp.lt.s32.totalorder %s116_s0, %s116_s0 }
  0x16   :  { %p150_p8 = scmp.ne.s32.totalorder %s116_s0, %s149_s19  ;;  %p155_p10 = scmp.lt.s32.totalorder %s149_s19, %s149_s19 }
  0x17   :  { %95 = vmatmul.mubr.f32.vlgmr.msra.gmra.mrb[0].mxu0 %v27_v2 }
  0x18   :  { %p156_p11 = por %p155_p10, %p154_p9 }
  0x1a   :  { %v29_v3 = vld [vmem:[#allocation5] sm:$0xff]  ;;  %p157_p12 = pnand %p156_p11, %p150_p8 }
  0xea   :  { %v96_v4 = vpop.f32.mrb[0].mxu0 }
  0xeb   :  { %v100_v5 = vadd.f32 %v96_v4, %v29_v3  ;;  %v98_v6 = vpop.f32.mrb[1].mxu0 }
  0xed   :  { %102 = vst.msk [vmem:[#allocation5] sm:$0xff] %vm25_vm0, %v100_v5 }
  0xf4   :  { %v106_v7 = vld [vmem:[#allocation5] sm:$0xff] }
  0xf5   :  { %v107_v8 = vmul.f32 0.00048828125, %v106_v7 }
  0xf7   :  { %108 = vst.msk [vmem:[#allocation5] sm:$0xff] %vm25_vm0, %v107_v8 }
  0xf8   :  { %160 = shalt.err (!%p157_p12)
}
  0xf9   :  { %s161_s22 = scalar_lea.hbm %s216_s1, 128 }
  0xfa   :  { %p162_p13 = scmp.ne.s32.totalorder %s216_s1, %s161_s22  ;;  %p165_p0 = scmp.lt.u32.totalorder %s161_s22, %s216_s1 }
  0xfc   :  { %p167_p1 = pnand %p165_p0, %p162_p13 }
  0xfe   :  { %170 = shalt.err (!%p167_p1)
}
  0xff   :  { %118 = dma.vmem_to_hbm [thread:$0]  %s116_s0, 128, %s216_s1, [#allocation4]  }
 0x100   :  { %173 = dma.done.wait [#allocation4], 128  }
 0x101   :  { %174 = vsyncadd [#allocation4], 4294967168 }
 0x102   :  { %122 = vsyncpa [#allocation3], 1 }
 0x103   :  { %123 = vsyncpa [#allocation4], 1 }

</bundles_post_ra>
